<compile_context>
chip_gen: v5e
topology: v5e:2x2
jax: 0.10.0
libtpu: 0.0.40
codegen_flags: <defaults>
</compile_context>

<pallas_src>
import jax
import jax.numpy as jnp
from jax.experimental import pallas as pl
from jax.experimental.pallas import tpu as pltpu


def cbow_kernel(tok_ref, emb_ref, w_ref, b_ref, o_ref):
    """Fused one-hot gather + linear_1 + ReLU + log_softmax for one batch tile.

    tok_ref: VMEM (Bt, n_tok)    int32 token ids (pipelined along the batch grid)
    emb_ref: VMEM (vocab, emb)   f32 embedding table (VMEM-resident, constant index_map)
    w_ref:   VMEM (n_tok*emb, H) bf16 linear_1.weight.T (resident, constant index_map)
    b_ref:   VMEM (1, H)         f32 linear_1.bias (resident, constant index_map)
    o_ref:   VMEM (Bt, H)        f32 log-softmax output (lane-dense, H = 4*128)
    """
    bt, n_tok = tok_ref.shape
    vocab, emb = emb_ref.shape

    tok = tok_ref[...]                                        # (Bt, n_tok) int32
    # Table stays f32 in VMEM; cast once to bf16 for the MXU (cheap VPU op; values are
    # identical to gathering the f32 rows and casting afterwards).
    emb_bf = emb_ref[...].astype(jnp.bfloat16)                # (vocab, emb)
    lane_iota = jax.lax.broadcasted_iota(jnp.int32, (bt, vocab), 1)

    # Independent per-token partials (no serial accumulator chain through the VPU).
    partials = []
    for t in range(n_tok):
        tok_t = tok[:, t:t + 1]                               # (Bt, 1)
        oh_t = jnp.where(lane_iota == tok_t, 1.0, 0.0).astype(jnp.bfloat16)  # (Bt, vocab)
        # Gather = exact one-hot row selection on the MXU.
        x_t = jnp.dot(oh_t, emb_bf,
                      preferred_element_type=jnp.float32).astype(jnp.bfloat16)  # (Bt, emb)
        w_t = w_ref[t * emb:(t + 1) * emb, :]                 # (emb, H) bf16, static slice
        partials.append(jnp.dot(x_t, w_t, preferred_element_type=jnp.float32))

    # Tree-sum the partials, then add the bias once.
    while len(partials) > 1:
        nxt = [partials[i] + partials[i + 1] for i in range(0, len(partials) - 1, 2)]
        if len(partials) % 2:
            nxt.append(partials[-1])
        partials = nxt
    h = partials[0] + b_ref[...]                              # (Bt, H) f32

    # ReLU then numerically stable log_softmax over the last axis, all in f32
    # (v5e-safe: no bf16 elementwise on the epilogue).
    h = jnp.maximum(h, 0.0)
    m = jnp.max(h, axis=-1, keepdims=True)
    s = h - m
    lse = jnp.log(jnp.sum(jnp.exp(s), axis=-1, keepdims=True))
    o_ref[...] = (s - lse).astype(o_ref.dtype)


def cbow_forward(inp, embedding, w1, b1_2d, *, block_b=None):
    """Batched CBOW forward.

    inp:       (B, 2*context) int32 token ids — each row is one module forward().
    embedding: (vocab, emb) float32 table.
    w1:        (2*context*emb, 512) bfloat16 == linear_1.weight.T.
    b1_2d:     (1, 512) float32 bias.
    Returns (B, 512) float32 log-probabilities.
    """
    b, n_tok = inp.shape
    vocab, emb = embedding.shape
    in_dim, hdim = w1.shape
    assert in_dim == n_tok * emb

    if block_b is None:
        block_b = min(b, 8)   # demo-sized; use 128 (v5e) / 256 (v6e, v7x) at scale
    assert b % block_b == 0

    flops = 2 * b * n_tok * (vocab * emb + emb * hdim)
    bytes_accessed = (inp.size * 4 + embedding.size * 4 + w1.size * 2
                      + b1_2d.size * 4 + b * hdim * 4)

    return pl.pallas_call(
        cbow_kernel,
        out_shape=jax.ShapeDtypeStruct((b, hdim), jnp.float32),
        grid=(b // block_b,),
        in_specs=[
            pl.BlockSpec((block_b, n_tok), lambda i: (i, 0)),   # token ids (pipelined)
            pl.BlockSpec((vocab, emb), lambda i: (0, 0)),       # emb table (resident)
            pl.BlockSpec((in_dim, hdim), lambda i: (0, 0)),     # W1 (resident)
            pl.BlockSpec((1, hdim), lambda i: (0, 0)),          # bias (resident)
        ],
        out_specs=pl.BlockSpec((block_b, hdim), lambda i: (i, 0)),
        compiler_params=pltpu.CompilerParams(
            dimension_semantics=("parallel",)),                 # v7x: both TensorCores
        cost_estimate=pl.CostEstimate(
            flops=flops, transcendentals=b * hdim, bytes_accessed=bytes_accessed),
    )(inp, embedding, w1, b1_2d)


def cbow_forward_single(inp_1d, embedding, w1, b1_2d):
    """Exact module forward(): one context window (2*context,) -> (1, 512) log-probs."""
    return cbow_forward(inp_1d.reshape(1, -1), embedding, w1, b1_2d, block_b=1)


if __name__ == "__main__":
    # Small, deterministic configuration consistent with the module.
    vocab_size = 50
    embedding_size = 32
    context_size = 3
    hidden_dim = 512
    n_tok = 2 * context_size
    in_features = n_tok * embedding_size          # 192
    batch = 16                                    # context windows folded into one call

    key = jax.random.PRNGKey(0)
    k_emb, k_w1, k_b1, k_inp = jax.random.split(key, 4)

    # Embedding table stays f32 (per review); W1 ships bf16; bias stays f32.
    embedding = jax.random.normal(k_emb, (vocab_size, embedding_size), dtype=jnp.float32)
    w1 = (jax.random.normal(k_w1, (in_features, hidden_dim), dtype=jnp.float32)
          * 0.05).astype(jnp.bfloat16)            # (in_features, H) == linear_1.weight.T
    b1 = jax.random.normal(k_b1, (hidden_dim,), dtype=jnp.float32) * 0.05
    b1_2d = b1.reshape(1, -1)                     # shaped once, off the hot path
    # TODO(synk): linear_2 is dead code in the reference forward(); not computed.

    # A batch of context windows, each of 2*context_size token ids.
    inp = jax.random.randint(k_inp, (batch, n_tok), 0, vocab_size, dtype=jnp.int32)

    out = jax.block_until_ready(cbow_forward(inp, embedding, w1, b1_2d, block_b=8))
    out1 = jax.block_until_ready(cbow_forward_single(inp[0], embedding, w1, b1_2d))

    # Pure-JAX reference using the same bf16-rounded operands (all other math in f32).
    hidden = embedding[inp].astype(jnp.bfloat16).astype(jnp.float32).reshape(batch, -1)
    pre = hidden @ w1.astype(jnp.float32) + b1_2d
    ref = jax.nn.log_softmax(jnp.maximum(pre, 0.0), axis=-1)

    assert out.shape == (batch, hidden_dim)
    assert out1.shape == (1, hidden_dim)
    err = float(jnp.max(jnp.abs(out - ref)))
    assert jnp.allclose(out, ref, atol=1e-3, rtol=1e-3), err
    assert jnp.allclose(out1, ref[0:1], atol=1e-3, rtol=1e-3)

    print("KERNEL_OK")
</pallas_src>

<mosaic_0001>
module attributes {stable_mosaic.version = 11 : i64} {
  func.func @cbow_kernel(%arg0: i32, %arg1: memref<8x6xi32, #tpu.memory_space<vmem>>, %arg2: memref<50x32xf32, #tpu.memory_space<vmem>>, %arg3: memref<192x512xbf16, #tpu.memory_space<vmem>>, %arg4: memref<1x512xf32, #tpu.memory_space<vmem>>, %arg5: memref<8x512xf32, #tpu.memory_space<vmem>>) attributes {dimension_semantics = [#tpu.dimension_semantics<parallel>], iteration_bounds = array<i64: 2>, scalar_prefetch = 0 : i64, scratch_operands = 0 : i64, tpu.core_type = #tpu.core_type<tc>, window_params = [{transform_indices = @transform_0, window_bounds = array<i64: 8, 6>}, {pipeline_mode = #tpu.pipeline_mode<synchronous>, transform_indices = @transform_1, window_bounds = array<i64: 50, 32>}, {pipeline_mode = #tpu.pipeline_mode<synchronous>, transform_indices = @transform_2, window_bounds = array<i64: 192, 512>}, {pipeline_mode = #tpu.pipeline_mode<synchronous>, transform_indices = @transform_3, window_bounds = array<i64: 1, 512>}, {transform_indices = @transform_4, window_bounds = array<i64: 8, 512>}]} {
    %c0 = arith.constant 0 : index
    %c0_0 = arith.constant 0 : index
    %0 = vector.load %arg1[%c0, %c0_0] : memref<8x6xi32, #tpu.memory_space<vmem>>, vector<8x6xi32>
    %c0_1 = arith.constant 0 : index
    %c0_2 = arith.constant 0 : index
    %1 = vector.load %arg2[%c0_1, %c0_2] : memref<50x32xf32, #tpu.memory_space<vmem>>, vector<50x32xf32>
    %2 = arith.truncf %1 : vector<50x32xf32> to vector<50x32xbf16>
    %3 = tpu.iota {dimensions = array<i32: 1>} : vector<8x50xi32>
    %4 = vector.extract_strided_slice %0 {offsets = [0, 0], sizes = [8, 1], strides = [1, 1]} : vector<8x6xi32> to vector<8x1xi32>
    %5 = vector.broadcast %4 : vector<8x1xi32> to vector<8x50xi32>
    %6 = arith.cmpi eq, %3, %5 : vector<8x50xi32>
    %cst = arith.constant 1.000000e+00 : f32
    %cst_3 = arith.constant 0.000000e+00 : f32
    %7 = vector.broadcast %cst : f32 to vector<8x50xf32>
    %8 = vector.broadcast %cst_3 : f32 to vector<8x50xf32>
    %9 = arith.select %6, %7, %8 : vector<8x50xi1>, vector<8x50xf32>
    %10 = arith.truncf %9 : vector<8x50xf32> to vector<8x50xbf16>
    %cst_4 = arith.constant dense<0.000000e+00> : vector<8x32xf32>
    %11 = tpu.matmul %10, %2, %cst_4 {dimension_numbers = #tpu.dot_dimension_numbers<[1], [0], [0], [1], [0, 0, 1, 1], [], []>} : vector<8x50xbf16>, vector<50x32xbf16>, vector<8x32xf32> -> vector<8x32xf32>
    %12 = arith.truncf %11 : vector<8x32xf32> to vector<8x32xbf16>
    %c0_5 = arith.constant 0 : index
    %c0_6 = arith.constant 0 : index
    %13 = vector.load %arg3[%c0_5, %c0_6] : memref<192x512xbf16, #tpu.memory_space<vmem>>, vector<32x512xbf16>
    %cst_7 = arith.constant dense<0.000000e+00> : vector<8x512xf32>
    %14 = tpu.matmul %12, %13, %cst_7 {dimension_numbers = #tpu.dot_dimension_numbers<[1], [0], [0], [1], [0, 0, 1, 1], [], []>} : vector<8x32xbf16>, vector<32x512xbf16>, vector<8x512xf32> -> vector<8x512xf32>
    %15 = vector.extract_strided_slice %0 {offsets = [0, 1], sizes = [8, 1], strides = [1, 1]} : vector<8x6xi32> to vector<8x1xi32>
    %16 = vector.broadcast %15 : vector<8x1xi32> to vector<8x50xi32>
    %17 = arith.cmpi eq, %3, %16 : vector<8x50xi32>
    %cst_8 = arith.constant 1.000000e+00 : f32
    %cst_9 = arith.constant 0.000000e+00 : f32
    %18 = vector.broadcast %cst_8 : f32 to vector<8x50xf32>
    %19 = vector.broadcast %cst_9 : f32 to vector<8x50xf32>
    %20 = arith.select %17, %18, %19 : vector<8x50xi1>, vector<8x50xf32>
    %21 = arith.truncf %20 : vector<8x50xf32> to vector<8x50xbf16>
    %cst_10 = arith.constant dense<0.000000e+00> : vector<8x32xf32>
    %22 = tpu.matmul %21, %2, %cst_10 {dimension_numbers = #tpu.dot_dimension_numbers<[1], [0], [0], [1], [0, 0, 1, 1], [], []>} : vector<8x50xbf16>, vector<50x32xbf16>, vector<8x32xf32> -> vector<8x32xf32>
    %23 = arith.truncf %22 : vector<8x32xf32> to vector<8x32xbf16>
    %c32 = arith.constant 32 : index
    %c0_11 = arith.constant 0 : index
    %24 = vector.load %arg3[%c32, %c0_11] : memref<192x512xbf16, #tpu.memory_space<vmem>>, vector<32x512xbf16>
    %cst_12 = arith.constant dense<0.000000e+00> : vector<8x512xf32>
    %25 = tpu.matmul %23, %24, %cst_12 {dimension_numbers = #tpu.dot_dimension_numbers<[1], [0], [0], [1], [0, 0, 1, 1], [], []>} : vector<8x32xbf16>, vector<32x512xbf16>, vector<8x512xf32> -> vector<8x512xf32>
    %26 = vector.extract_strided_slice %0 {offsets = [0, 2], sizes = [8, 1], strides = [1, 1]} : vector<8x6xi32> to vector<8x1xi32>
    %27 = vector.broadcast %26 : vector<8x1xi32> to vector<8x50xi32>
    %28 = arith.cmpi eq, %3, %27 : vector<8x50xi32>
    %cst_13 = arith.constant 1.000000e+00 : f32
    %cst_14 = arith.constant 0.000000e+00 : f32
    %29 = vector.broadcast %cst_13 : f32 to vector<8x50xf32>
    %30 = vector.broadcast %cst_14 : f32 to vector<8x50xf32>
    %31 = arith.select %28, %29, %30 : vector<8x50xi1>, vector<8x50xf32>
    %32 = arith.truncf %31 : vector<8x50xf32> to vector<8x50xbf16>
    %cst_15 = arith.constant dense<0.000000e+00> : vector<8x32xf32>
    %33 = tpu.matmul %32, %2, %cst_15 {dimension_numbers = #tpu.dot_dimension_numbers<[1], [0], [0], [1], [0, 0, 1, 1], [], []>} : vector<8x50xbf16>, vector<50x32xbf16>, vector<8x32xf32> -> vector<8x32xf32>
    %34 = arith.truncf %33 : vector<8x32xf32> to vector<8x32xbf16>
    %c64 = arith.constant 64 : index
    %c0_16 = arith.constant 0 : index
    %35 = vector.load %arg3[%c64, %c0_16] : memref<192x512xbf16, #tpu.memory_space<vmem>>, vector<32x512xbf16>
    %cst_17 = arith.constant dense<0.000000e+00> : vector<8x512xf32>
    %36 = tpu.matmul %34, %35, %cst_17 {dimension_numbers = #tpu.dot_dimension_numbers<[1], [0], [0], [1], [0, 0, 1, 1], [], []>} : vector<8x32xbf16>, vector<32x512xbf16>, vector<8x512xf32> -> vector<8x512xf32>
    %37 = vector.extract_strided_slice %0 {offsets = [0, 3], sizes = [8, 1], strides = [1, 1]} : vector<8x6xi32> to vector<8x1xi32>
    %38 = vector.broadcast %37 : vector<8x1xi32> to vector<8x50xi32>
    %39 = arith.cmpi eq, %3, %38 : vector<8x50xi32>
    %cst_18 = arith.constant 1.000000e+00 : f32
    %cst_19 = arith.constant 0.000000e+00 : f32
    %40 = vector.broadcast %cst_18 : f32 to vector<8x50xf32>
    %41 = vector.broadcast %cst_19 : f32 to vector<8x50xf32>
    %42 = arith.select %39, %40, %41 : vector<8x50xi1>, vector<8x50xf32>
    %43 = arith.truncf %42 : vector<8x50xf32> to vector<8x50xbf16>
    %cst_20 = arith.constant dense<0.000000e+00> : vector<8x32xf32>
    %44 = tpu.matmul %43, %2, %cst_20 {dimension_numbers = #tpu.dot_dimension_numbers<[1], [0], [0], [1], [0, 0, 1, 1], [], []>} : vector<8x50xbf16>, vector<50x32xbf16>, vector<8x32xf32> -> vector<8x32xf32>
    %45 = arith.truncf %44 : vector<8x32xf32> to vector<8x32xbf16>
    %c96 = arith.constant 96 : index
    %c0_21 = arith.constant 0 : index
    %46 = vector.load %arg3[%c96, %c0_21] : memref<192x512xbf16, #tpu.memory_space<vmem>>, vector<32x512xbf16>
    %cst_22 = arith.constant dense<0.000000e+00> : vector<8x512xf32>
    %47 = tpu.matmul %45, %46, %cst_22 {dimension_numbers = #tpu.dot_dimension_numbers<[1], [0], [0], [1], [0, 0, 1, 1], [], []>} : vector<8x32xbf16>, vector<32x512xbf16>, vector<8x512xf32> -> vector<8x512xf32>
    %48 = vector.extract_strided_slice %0 {offsets = [0, 4], sizes = [8, 1], strides = [1, 1]} : vector<8x6xi32> to vector<8x1xi32>
    %49 = vector.broadcast %48 : vector<8x1xi32> to vector<8x50xi32>
    %50 = arith.cmpi eq, %3, %49 : vector<8x50xi32>
    %cst_23 = arith.constant 1.000000e+00 : f32
    %cst_24 = arith.constant 0.000000e+00 : f32
    %51 = vector.broadcast %cst_23 : f32 to vector<8x50xf32>
    %52 = vector.broadcast %cst_24 : f32 to vector<8x50xf32>
    %53 = arith.select %50, %51, %52 : vector<8x50xi1>, vector<8x50xf32>
    %54 = arith.truncf %53 : vector<8x50xf32> to vector<8x50xbf16>
    %cst_25 = arith.constant dense<0.000000e+00> : vector<8x32xf32>
    %55 = tpu.matmul %54, %2, %cst_25 {dimension_numbers = #tpu.dot_dimension_numbers<[1], [0], [0], [1], [0, 0, 1, 1], [], []>} : vector<8x50xbf16>, vector<50x32xbf16>, vector<8x32xf32> -> vector<8x32xf32>
    %56 = arith.truncf %55 : vector<8x32xf32> to vector<8x32xbf16>
    %c128 = arith.constant 128 : index
    %c0_26 = arith.constant 0 : index
    %57 = vector.load %arg3[%c128, %c0_26] : memref<192x512xbf16, #tpu.memory_space<vmem>>, vector<32x512xbf16>
    %cst_27 = arith.constant dense<0.000000e+00> : vector<8x512xf32>
    %58 = tpu.matmul %56, %57, %cst_27 {dimension_numbers = #tpu.dot_dimension_numbers<[1], [0], [0], [1], [0, 0, 1, 1], [], []>} : vector<8x32xbf16>, vector<32x512xbf16>, vector<8x512xf32> -> vector<8x512xf32>
    %59 = vector.extract_strided_slice %0 {offsets = [0, 5], sizes = [8, 1], strides = [1, 1]} : vector<8x6xi32> to vector<8x1xi32>
    %60 = vector.broadcast %59 : vector<8x1xi32> to vector<8x50xi32>
    %61 = arith.cmpi eq, %3, %60 : vector<8x50xi32>
    %cst_28 = arith.constant 1.000000e+00 : f32
    %cst_29 = arith.constant 0.000000e+00 : f32
    %62 = vector.broadcast %cst_28 : f32 to vector<8x50xf32>
    %63 = vector.broadcast %cst_29 : f32 to vector<8x50xf32>
    %64 = arith.select %61, %62, %63 : vector<8x50xi1>, vector<8x50xf32>
    %65 = arith.truncf %64 : vector<8x50xf32> to vector<8x50xbf16>
    %cst_30 = arith.constant dense<0.000000e+00> : vector<8x32xf32>
    %66 = tpu.matmul %65, %2, %cst_30 {dimension_numbers = #tpu.dot_dimension_numbers<[1], [0], [0], [1], [0, 0, 1, 1], [], []>} : vector<8x50xbf16>, vector<50x32xbf16>, vector<8x32xf32> -> vector<8x32xf32>
    %67 = arith.truncf %66 : vector<8x32xf32> to vector<8x32xbf16>
    %c160 = arith.constant 160 : index
    %c0_31 = arith.constant 0 : index
    %68 = vector.load %arg3[%c160, %c0_31] : memref<192x512xbf16, #tpu.memory_space<vmem>>, vector<32x512xbf16>
    %cst_32 = arith.constant dense<0.000000e+00> : vector<8x512xf32>
    %69 = tpu.matmul %67, %68, %cst_32 {dimension_numbers = #tpu.dot_dimension_numbers<[1], [0], [0], [1], [0, 0, 1, 1], [], []>} : vector<8x32xbf16>, vector<32x512xbf16>, vector<8x512xf32> -> vector<8x512xf32>
    %70 = arith.addf %14, %25 : vector<8x512xf32>
    %71 = arith.addf %36, %47 : vector<8x512xf32>
    %72 = arith.addf %58, %69 : vector<8x512xf32>
    %73 = arith.addf %70, %71 : vector<8x512xf32>
    %74 = arith.addf %73, %72 : vector<8x512xf32>
    %c0_33 = arith.constant 0 : index
    %c0_34 = arith.constant 0 : index
    %75 = vector.load %arg4[%c0_33, %c0_34] : memref<1x512xf32, #tpu.memory_space<vmem>>, vector<1x512xf32>
    %76 = vector.broadcast %75 : vector<1x512xf32> to vector<8x512xf32>
    %77 = arith.addf %74, %76 : vector<8x512xf32>
    %cst_35 = arith.constant 0.000000e+00 : f32
    %78 = vector.broadcast %cst_35 : f32 to vector<8x512xf32>
    %79 = arith.maximumf %77, %78 : vector<8x512xf32>
    %cst_36 = arith.constant dense<0xFF800000> : vector<8xf32>
    %80 = vector.multi_reduction <maximumf>, %79, %cst_36 [1] : vector<8x512xf32> to vector<8xf32>
    %81 = vector.shape_cast %80 : vector<8xf32> to vector<8x1xf32>
    %82 = vector.broadcast %81 : vector<8x1xf32> to vector<8x512xf32>
    %83 = arith.subf %79, %82 : vector<8x512xf32>
    %84 = math.exp %83 : vector<8x512xf32>
    %cst_37 = arith.constant dense<0.000000e+00> : vector<8xf32>
    %85 = vector.multi_reduction <add>, %84, %cst_37 [1] : vector<8x512xf32> to vector<8xf32>
    %86 = vector.shape_cast %85 : vector<8xf32> to vector<8x1xf32>
    %87 = math.log %86 : vector<8x1xf32>
    %88 = vector.broadcast %87 : vector<8x1xf32> to vector<8x512xf32>
    %89 = arith.subf %83, %88 : vector<8x512xf32>
    %c0_38 = arith.constant 0 : index
    %c0_39 = arith.constant 0 : index
    %90 = vector.load %arg5[%c0_38, %c0_39] : memref<8x512xf32, #tpu.memory_space<vmem>>, vector<8x512xf32>
    tpu.vector_store %arg5[%c0_38, %c0_39], %89 {strides = array<i32>} : memref<8x512xf32, #tpu.memory_space<vmem>>, vector<8x512xf32>,
    return
  }
  func.func @transform_0(%arg0: i32) -> (i32, i32) {
    %c0_i32 = arith.constant 0 : i32
    %c0_i32_0 = arith.constant 0 : i32
    return %arg0, %c0_i32 : i32, i32
  }
  func.func @transform_1(%arg0: i32) -> (i32, i32) {
    %c0_i32 = arith.constant 0 : i32
    %c0_i32_0 = arith.constant 0 : i32
    %c0_i32_1 = arith.constant 0 : i32
    return %c0_i32, %c0_i32_0 : i32, i32
  }
  func.func @transform_2(%arg0: i32) -> (i32, i32) {
    %c0_i32 = arith.constant 0 : i32
    %c0_i32_0 = arith.constant 0 : i32
    %c0_i32_1 = arith.constant 0 : i32
    return %c0_i32, %c0_i32_0 : i32, i32
  }
  func.func @transform_3(%arg0: i32) -> (i32, i32) {
    %c0_i32 = arith.constant 0 : i32
    %c0_i32_0 = arith.constant 0 : i32
    %c0_i32_1 = arith.constant 0 : i32
    return %c0_i32, %c0_i32_0 : i32, i32
  }
  func.func @transform_4(%arg0: i32) -> (i32, i32) {
    %c0_i32 = arith.constant 0 : i32
    %c0_i32_0 = arith.constant 0 : i32
    return %arg0, %c0_i32 : i32, i32
  }
}

</mosaic_0001>

<bundles_post_ra>
// kernel: tpu_custom_call.1
= control target key start
LH: loop header
LB: loop body
LE: loop exit
PB: predicated region body
PF: predicated region fallthrough
CT: control target
= control target key end

     0   :  { %9 = vsyncpa [#allocation3], 0  ;;  %s1856_s0 = inlined_call_operand.vmem [shape: s32[16,6], index: 0, kind: input, shape index: {}]   ;;  %s1857_s1 = inlined_call_operand.vmem [shape: f32[50,32], index: 1, kind: input, shape index: {}]   ;;  %s1858_s2 = inlined_call_operand.hbm [shape: bf16[192,512], index: 2, kind: input, shape index: {}]   ;;  %s1859_s3 = inlined_call_operand.vmem [shape: f32[1,512], index: 3, kind: input, shape index: {}]   ;;  %s1860_s4 = inlined_call_operand.hbm [shape: f32[16,512], index: 4, kind: output, shape index: {}]  }
   0x1   :  { %10 = vsyncpa [#allocation4], 0 }
   0x2   :  { %12 = vsyncpa [#allocation4 + $0x1], 0  ;;  %s1626_s15 = smov 0   ;;  %s1628_s16 = smov 0  }
   0x3   :  { %s1630_s17 = smov 0   ;;  %s1632_s18 = smov 0  }
   0x4 LB: > { %s1647_s19 = sadd.s32 4294967295, %s1589_s18   ;;  %s1133_s20 = sadd.s32 4294967294, %s1589_s18   ;;  %s1589_s18 = sphi %s1632_s18, %s1866_s18   ;;  %s1585_s17 = sphi %s1630_s17, %s1865_s17   ;;  %s1581_s16 = sphi %s1628_s16, %s1864_s16   ;;  %s1577_s15 = sphi %s1626_s15, %s1863_s15  }
   0x5   : > { %s1651_s21 = sadd.s32 1, %s1589_s18   ;;  %s114_s22 = sadd.s32 1, %s1585_s17 }
   0x6   : > { %s111_s23 = ssub.s32 %s1589_s18, %s1651_s21  ;;  %p124_p0 = scmp.ne.s32.totalorder %s1585_s17, %s1581_s16 }
   0x7   : > { %p112_p1 = scmp.eq.s32.totalorder %s111_s23, 0  ;;  %p125_p2 = scmp.eq.s32.totalorder %s1647_s19, 1 }
   0x8   : > { %p130_p3 = scmp.ne.s32.totalorder %s1581_s16, %s1577_s15  ;;  %p131_p4 = scmp.eq.s32.totalorder %s1133_s20, 1 }
   0x9   : > { %s1662_s24 = scalar_select %p112_p1, %s1585_s17, %s114_s22  }
   0xa   : > { %p1664_p5 = por %p125_p2, %p124_p0  ;;  %p1668_p6 = por %p131_p4, %p130_p3 }
   0xb   : > { %p1134_p7 = scmp.ge.s32.totalorder %s1589_s18, 1  ;;  %p138_p8 = scmp.lt.s32.totalorder %s1589_s18, 3 }
   0xc   : > { %p1431_p9 = scmp.eq.s32.totalorder %s1647_s19, 0  ;;  %s152_s29 = sshll.u32 %s1858_s2, 4  ;;  %s153_s29 = int_to_ptr.hbm [resolvable:$true] %s152_s29 }
   0xd   : > { %p139_p10 = pnand %p1134_p7, %p138_p8  ;;  %s1591_s30 = smov [#allocation2]  }
   0xe   : > { %s154_s5 = sshll.u32 %s1591_s30, 4  ;;  %s1592_s6 = smov 256   ;;  %s155_s5 = int_to_ptr.vmem [resolvable:$true] %s154_s5 }
   0xf   : > { %p1423_p11 = pneg %p139_p10  ;;  %s1593_s7 = smov 16  }
  0x10   : > { %180 = sbr.rel (%p139_p10) target bundleno = 918 (0x396), region = 36 }
  0x11   : > { %p1424_p12 = pnand %p1431_p9, %p1423_p11 }
  0x13   : > { %1426 = dma.hbm_to_vmem [thread:$0]  (!%p1424_p12), %s153_s29, 6144, %s155_s5, [#allocation3], %s1592_s6, %s1592_s6, %s1593_s7  }
  0x15   : > { %1568 = dma.done.wait (%p1431_p9), [#allocation3], 6144  }
  0x16   : > { %1570 = vsyncadd (%p1431_p9), [#allocation3], 4294961152  ;;  %p206_p13 = scmp.lt.s32.totalorder %s1647_s19, 1  ;;  %v1594_v0 = vmov 1   ;;  %v1595_v1 = vmov 5   ;;  %vm235_vm0 = vcmask 1040384   ;;  %v223_v18 = vlaneseq }
  0x17   : > { %1476 = vset.pattern.permute.xlu0 %v1594_v0  ;;  %1478 = vset.pattern.permute.xlu1 %v1595_v1  ;;  %v218_v3 = vld [vmem:[%s1857_s1 + $0x30] sm:$0x3]  ;;  %v216_v5 = vld [vmem:[%s1857_s1 + $0x20] sm:$0xff]  ;;  %v217_v6 = vld [vmem:[%s1857_s1 + $0x28] sm:$0xff]  ;;  %v1596_v12 = vmov 3   ;;  %v1597_v16 = vmov 0  }
  0x18   : > { %s207_s8 = scalar_select %p206_p13, %s1647_s19, 1  ;;  %v222_v4 = vpack.c.bf16 %v218_v3, %v218_v3  ;;  %v1701_v8 = vpack.c.bf16 %v217_v6, %v216_v5  ;;  %v214_v9 = vld [vmem:[%s1857_s1 + $0x10] sm:$0xff]  ;;  %v215_v10 = vld [vmem:[%s1857_s1 + $0x18] sm:$0xff]  ;;  %v212_v13 = vld [vmem:[%s1857_s1] sm:$0xff]  ;;  %v1598_v17 = vmov 2   ;;  %v1734_v19 = vand.u32 127, %v223_v18 }
  0x19   : > { %v1711_v11 = vpack.c.bf16 %v215_v10, %v214_v9  ;;  %v213_v14 = vld [vmem:[%s1857_s1 + $0x8] sm:$0xff]  ;;  %1480 = vset.pattern.permute.xlu2 %v1598_v17  ;;  %v1599_v21 = vmov 0.0   ;;  %vm231_vm2 = vcmask 408576   ;;  %v1600_v27 = vmov 4   ;;  %v1161_v28 = vld [vmem:[#allocation2 + $0x60] sm:$0xf] }
  0x1a   : > { %s1140_s9 = sshll.u32 %s207_s8, 3  ;;  %v1698_v7 = vsel %vm235_vm0, %v222_v4, 0  ;;  %v1722_v15 = vpack.c.bf16 %v213_v14, %v212_v13  ;;  %v1382_v29 = vld [vmem:[#allocation2 + $0x6c] sm:$0xf0]  ;;  %v1380_v30 = vld [vmem:[#allocation2 + $0x64] sm:$0xf] }
  0x1b   : > { %s209_s12 = scalar_lea.vmem %s1856_s0, %s1140_s9  ;;  %274 = vmatpush.bf16.msra.mxu1 %v1698_v7  ;;  %243 = vmatpush.bf16.msra.mxu0 %v1698_v7  ;;  %v1162_v31 = vor.u32 %v1382_v29, %v1161_v28  ;;  %v1163_v32 = vld [vmem:[#allocation2 + $0x70] sm:$0xf0]  ;;  %v1145_v38 = vld [vmem:[#allocation2 + $0x40] sm:$0xf]  ;;  %v1378_v39 = vld [vmem:[#allocation2 + $0x4c] sm:$0xf0] }
  0x1c   : > { %v211_v2 = vld [vmem:[%s209_s12] sm:$0xff]  ;;  %v1166_v33 = vor.u32 %v1380_v30, %v1163_v32  ;;  %v1146_v41 = vor.u32 %v1378_v39, %v1145_v38  ;;  %v1147_v42 = vld [vmem:[#allocation2 + $0x50] sm:$0xf0]  ;;  %v1381_v44 = vld [vmem:[#allocation2 + $0x6c] sm:$0xf]  ;;  %vm332_vm6 = vcmask 261120  }
  0x1d   : > { %262 = vperm.xlu0 %1476, %v211_v2   ;;  %577 = vperm.xlu1 %1478, %v211_v2   ;;  %v1376_v40 = vld [vmem:[#allocation2 + $0x44] sm:$0xf]  ;;  %v1171_v45 = vld [vmem:[#allocation2 + $0x78] sm:$0xf0]  ;;  %v1377_v50 = vld [vmem:[#allocation2 + $0x4c] sm:$0xf] }
  0x1e   : > { %389 = vperm.xlu2 %1480, %v211_v2   ;;  %342 = vmatpush.bf16.msra.mxu2 %v1162_v31  ;;  %v1150_v43 = vor.u32 %v1376_v40, %v1147_v42  ;;  %v1174_v47 = vor.u32 %v1381_v44, %v1171_v45  ;;  %v1155_v51 = vld [vmem:[#allocation2 + $0x58] sm:$0xf0]  ;;  %v1169_v52 = vld [vmem:[#allocation2 + $0x68] sm:$0xf]  ;;  %v1383_v54 = vld [vmem:[#allocation2 + $0x74] sm:$0xf0] }
  0x1f   : > { %275 = vmatpush.bf16.msra.mxu1 %v1701_v8  ;;  %244 = vmatpush.bf16.msra.mxu0 %v1701_v8  ;;  %v1158_v53 = vor.u32 %v1377_v50, %v1155_v51  ;;  %v1153_v55 = vld [vmem:[#allocation2 + $0x48] sm:$0xf]  ;;  %v1379_v56 = vld [vmem:[#allocation2 + $0x54] sm:$0xf0]  ;;  %v1170_v57 = vor.u32 %v1383_v54, %v1169_v52  ;;  %v1397_v61 = vld [vmem:[#allocation2 + $0xec] sm:$0xf] }
  0x20   : > { %355 = vmatpush.bf16.msra.mxu3 %v1166_v33  ;;  %v1154_v58 = vor.u32 %v1379_v56, %v1153_v55  ;;  %v1207_v59 = vld [vmem:[#allocation2 + $0xe8] sm:$0xf]  ;;  %v1399_v60 = vld [vmem:[#allocation2 + $0xf4] sm:$0xf0]  ;;  %v1209_v63 = vld [vmem:[#allocation2 + $0xf8] sm:$0xf0] }
  0x21   : > { %v1208_v62 = vor.u32 %v1399_v60, %v1207_v59  ;;  %v1212_v0 = vor.u32 %v1397_v61, %v1209_v63  ;;  %v1393_v3 = vld [vmem:[#allocation2 + $0xcc] sm:$0xf]  ;;  %v1193_v4 = vld [vmem:[#allocation2 + $0xd8] sm:$0xf0]  ;;  %v1396_v9 = vld [vmem:[#allocation2 + $0xe4] sm:$0xf] }
  0x22   : > { %343 = vmatpush.bf16.msra.mxu2 %v1146_v41  ;;  %v1196_v6 = vor.u32 %v1393_v3, %v1193_v4  ;;  %v1201_v10 = vld [vmem:[#allocation2 + $0xf0] sm:$0xf0]  ;;  %v1398_v13 = vld [vmem:[#allocation2 + $0xec] sm:$0xf0]  ;;  %v1392_v17 = vld [vmem:[#allocation2 + $0xc4] sm:$0xf] }
  0x23   : > { %276 = vmatpush.bf16.msra.mxu1 %v1711_v11  ;;  %245 = vmatpush.bf16.msra.mxu0 %v1711_v11  ;;  %v1415_v38 = vld [vmem:[#allocation2 + $0x174] sm:$0xf0]  ;;  %v1413_v39 = vld [vmem:[#allocation2 + $0x16c] sm:$0xf]  ;;  %v1247_v40 = vld [vmem:[#allocation2 + $0x178] sm:$0xf0] }
  0x24   : > { %356 = vmatpush.bf16.msra.mxu3 %v1150_v43  ;;  %v1250_v41 = vor.u32 %v1413_v39, %v1247_v40  ;;  %v1237_v44 = vld [vmem:[#allocation2 + $0x160] sm:$0xf]  ;;  %v1414_v45 = vld [vmem:[#allocation2 + $0x16c] sm:$0xf0]  ;;  %v1411_v50 = vld [vmem:[#allocation2 + $0x154] sm:$0xf0] }
  0x25   : > { %1477 = vset.pattern.permute.xlu0 %v1596_v12  ;;  %1479 = vset.pattern.permute.xlu1 %v1597_v16  ;;  %v1199_v12 = vld [vmem:[#allocation2 + $0xe0] sm:$0xf]  ;;  %v1204_v16 = vor.u32 %v1396_v9, %v1201_v10  ;;  %v1231_v54 = vld [vmem:[#allocation2 + $0x158] sm:$0xf0]  ;;  %v1410_v59 = vld [vmem:[#allocation2 + $0x14c] sm:$0xf0] }
  0x26   : > { %420 = vperm.xlu0 %1477, %v211_v2   ;;  %226 = vperm.xlu1 %1479, %v211_v2   ;;  %v1200_v18 = vor.u32 %v1398_v13, %v1199_v12  ;;  %v1408_v60 = vld [vmem:[#allocation2 + $0x144] sm:$0xf]  ;;  %v1281_v4 = vld [vmem:[#allocation2 + $0x28] sm:$0xf]  ;;  %v1283_v10 = vld [vmem:[#allocation2 + $0x38] sm:$0xf0] }
  0x27   : > { %277 = vmatpush.bf16.msra.mxu1 %v1722_v15  ;;  %246 = vmatpush.bf16.msra.mxu0 %v1722_v15  ;;  %v1317_v39 = vld [vmem:[#allocation2 + $0xa8] sm:$0xf]  ;;  %v1389_v40 = vld [vmem:[#allocation2 + $0xac] sm:$0xf]  ;;  %s203_s12 = sand.u32 1, %s1581_s16   ;;  %s1416_s14 = sshll.u32 %s1647_s19, 5 }
  0x28   : > { %1481 = vset.pattern.permute.xlu2 %v1600_v27  ;;  %381 = vmatpush.bf16.msrb.mxu3 %v1174_v47  ;;  %v1238_v47 = vor.u32 %v1414_v45, %v1237_v44  ;;  %v1388_v44 = vld [vmem:[#allocation2 + $0xa4] sm:$0xf]  ;;  %v1311_v45 = vld [vmem:[#allocation2 + $0xb0] sm:$0xf0]  ;;  %s1139_s13 = sshll.u32 %s203_s12, 5  ;;  %s1057_s23 = scalar_lea.hbm %s1860_s4, %s1416_s14 }
  0x29   : > { %546 = vperm.xlu2 %1481, %v211_v2   ;;  %368 = vmatpush.bf16.msrb.mxu2 %v1170_v57  ;;  %v1395_v2 = vld [vmem:[#allocation2 + $0xd4] sm:$0xf0]  ;;  %s205_s27 = scalar_lea.vmem [#allocation5], %s1139_s13  ;;  %s1061_s29 = sshll.u32 %s1057_s23, 4  ;;  %s1062_s29 = int_to_ptr.hbm [resolvable:$true] %s1061_s29 }
  0x2a   : > { %s1059_s28 = sshll.u32 %s205_s27, 4  ;;  %s1046_s19 = scalar_lea.sflag [#allocation4], %s203_s12  ;;  %s1060_s28 = int_to_ptr.vmem [resolvable:$true] %s1059_s28 }
  0x2b   : > { %432 = vmatpush.bf16.msrb.mxu1 %v1698_v7  ;;  %401 = vmatpush.bf16.msrb.mxu0 %v1698_v7  ;;  %s1537_s30 = sshra.s32 %s1062_s29, 4  ;;  %s1543_s8 = scalar_lea.hbm %s1860_s4, 64  ;;  %s1538_s30 = int_to_ptr.hbm [resolvable:$true] %s1537_s30 }
  0x2c   : > { %382 = vmatpush.bf16.msrb.mxu3 %v1158_v53  ;;  %v1409_v53 = vld [vmem:[#allocation2 + $0x14c] sm:$0xf]  ;;  %s1539_s5 = scalar_lea.hbm %s1538_s30, 32  ;;  %p1544_p3 = scmp.lt.s32.totalorder %s1538_s30, %s1860_s4 }
  0x2d   : > { %369 = vmatpush.bf16.msrb.mxu2 %v1154_v58  ;;  %v1234_v57 = vor.u32 %v1409_v53, %v1231_v54  ;;  %v1221_v58 = vld [vmem:[#allocation2 + $0x140] sm:$0xf]  ;;  %v1314_v53 = vor.u32 %v1388_v44, %v1311_v45  ;;  %v1385_v54 = vld [vmem:[#allocation2 + $0x8c] sm:$0xf]  ;;  %p1540_p0 = scmp.ne.s32.totalorder %s1538_s30, %s1539_s5  ;;  %p1545_p4 = scmp.lt.s32.totalorder %s1543_s8, %s1539_s5 }
  0x2e   : > { %1482 = vset.pattern.permute.xlu0 %v1595_v1  ;;  %v1191_v1 = vld [vmem:[#allocation2 + $0xc8] sm:$0xf]  ;;  %v1222_v61 = vor.u32 %v1410_v59, %v1221_v58  ;;  %v1293_v58 = vld [vmem:[#allocation2 + $0x80] sm:$0xf]  ;;  %v1386_v59 = vld [vmem:[#allocation2 + $0x8c] sm:$0xf0] }
  0x2f   : > { %433 = vmatpush.bf16.msrb.mxu1 %v1701_v8  ;;  %402 = vmatpush.bf16.msrb.mxu0 %v1701_v8  ;;  %v1192_v5 = vor.u32 %v1395_v2, %v1191_v1  ;;  %p1541_p1 = pnand %p1540_p0, %p1664_p5  ;;  %p1546_p7 = por %p1545_p4, %p1544_p3 }
  0x31   : > { %p1542_p2 = pneg %p1541_p1 }
  0x33   : > { %434 = vmatpush.bf16.msrb.mxu1 %v1711_v11  ;;  %403 = vmatpush.bf16.msrb.mxu0 %v1711_v11  ;;  %p1547_p8 = pnand %p1546_p7, %p1542_p2 }
  0x37   : > { %435 = vmatpush.bf16.msrb.mxu1 %v1722_v15  ;;  %404 = vmatpush.bf16.msrb.mxu0 %v1722_v15 }
  0x78   : > { %v390_v46 = vpop.permute.xlu2 %389 }
  0x79   : > { %vm391_vm5 = vcmp.eq.s32.totalorder %v1734_v19, %v390_v46  ;;  %v1412_v46 = vld [vmem:[#allocation2 + $0x164] sm:$0xf] }
  0x7a   : > { %v392_v48 = vsel %vm391_vm5, 1.0, %v1599_v21 }
  0x7b   : > { %v393_v49 = vpack.c.bf16 %v392_v48, %v392_v48  ;;  %v1239_v48 = vld [vmem:[#allocation2 + $0x170] sm:$0xf0] }
  0x7c   : > { %v1242_v51 = vor.u32 %v1412_v46, %v1239_v48 }
  0x83   : > { %v547_v31 = vpop.permute.xlu2 %546 }
  0x84   : > { %vm548_vm8 = vcmp.eq.s32.totalorder %v1734_v19, %v547_v31  ;;  %v1370_v31 = vld [vmem:[#allocation2 + $0xc] sm:$0xf0] }
  0x8f   : > { %v263_v20 = vpop.permute.xlu0 %262  ;;  %v1742_v34 = vpop.permute.xlu1 %577 }
  0x90   : > { %vm264_vm1 = vcmp.eq.s32.totalorder %v1734_v19, %v263_v20  ;;  %vm579_vm7 = vcmp.eq.s32.totalorder %v1734_v19, %v1742_v34 }
  0x91   : > { %v265_v22 = vsel %vm264_vm1, 1.0, %v1599_v21 }
  0x92   : > { %v266_v23 = vpack.c.bf16 %v265_v22, %v265_v22  ;;  %v1185_v22 = vld [vmem:[#allocation2 + $0xd0] sm:$0xf0] }
  0x94   : > { %1142 = vmatmul.msk.bf16.vlgmr.msra.gmra.mxu1 %vm231_vm2, %v266_v23  ;;  %v1183_v23 = vld [vmem:[#allocation2 + $0xc0] sm:$0xf] }
  0x95   : > { %538 = vmatpush.bf16.msra.mxu1 %v1212_v0 }
  0x98   : > { %v421_v24 = vpop.permute.xlu0 %420  ;;  %v227_v35 = vpop.permute.xlu1 %226 }
  0x99   : > { %vm422_vm3 = vcmp.eq.s32.totalorder %v1734_v19, %v421_v24  ;;  %vm228_vm4 = vcmp.eq.s32.totalorder %v1734_v19, %v227_v35  ;;  %539 = vmatpush.bf16.msra.mxu1 %v1196_v6  ;;  %v1394_v24 = vld [vmem:[#allocation2 + $0xcc] sm:$0xf0]  ;;  %v1245_v19 = vld [vmem:[#allocation2 + $0x168] sm:$0xf]  ;;  %v1373_v6 = vld [vmem:[#allocation2 + $0x2c] sm:$0xf] }
  0x9a   : > { %v423_v25 = vsel %vm422_vm3, 1.0, %v1599_v21  ;;  %v229_v36 = vsel %vm228_vm4, 1.0, %v1599_v21  ;;  %v1286_v12 = vor.u32 %v1373_v6, %v1283_v10  ;;  %v1407_v10 = vld [vmem:[#allocation2 + $0x134] sm:$0xf0] }
  0x9b   : > { %v424_v26 = vpack.c.bf16 %v423_v25, %v423_v25  ;;  %v230_v37 = vpack.c.bf16 %v229_v36, %v229_v36  ;;  %v1188_v25 = vor.u32 %v1392_v17, %v1185_v22  ;;  %v1374_v17 = vld [vmem:[#allocation2 + $0x2c] sm:$0xf0]  ;;  %v1275_v22 = vld [vmem:[#allocation2 + $0x30] sm:$0xf0] }
  0x9d   : > { %1141 = vmatmul.msk.bf16.vlgmr.msra.gmra.mxu0 %vm231_vm2, %v230_v37 }
  0x9e   : > { %525 = vmatpush.bf16.msra.mxu0 %v1208_v62  ;;  %v1223_v62 = vld [vmem:[#allocation2 + $0x150] sm:$0xf0] }
  0x9f   : > { %v1226_v63 = vor.u32 %v1408_v60, %v1223_v62  ;;  %v1384_v60 = vld [vmem:[#allocation2 + $0x84] sm:$0xf] }
  0xa2   : > { %526 = vmatpush.bf16.msra.mxu0 %v1192_v5  ;;  %v1375_v5 = vld [vmem:[#allocation2 + $0x34] sm:$0xf0] }
  0xa3   : > { %v1282_v9 = vor.u32 %v1375_v5, %v1281_v4 }
  0xa4   : > { %1180 = vmatmul.msk.bf16.vlgmr.msrb.gmra.mxu1 %vm231_vm2, %v424_v26  ;;  %v1184_v26 = vor.u32 %v1394_v24, %v1183_v23  ;;  %v1265_v23 = vld [vmem:[#allocation2 + $0x8] sm:$0xf]  ;;  %v1371_v24 = vld [vmem:[#allocation2 + $0x14] sm:$0xf0] }
  0xa5   : > { %669 = vmatpush.bf16.msrb.mxu1 %v1242_v51  ;;  %v1387_v51 = vld [vmem:[#allocation2 + $0x94] sm:$0xf0] }
  0xa9   : > { %670 = vmatpush.bf16.msrb.mxu1 %v1226_v63 }
  0xad   : > { %1179 = vmatmul.msk.bf16.vlgmr.msrb.gmra.mxu0 %vm231_vm2, %v393_v49  ;;  %v1229_v49 = vld [vmem:[#allocation2 + $0x148] sm:$0xf] }
  0xae   : > { %v1230_v52 = vor.u32 %v1411_v50, %v1229_v49  ;;  %656 = vmatpush.bf16.msrb.mxu0 %v1238_v47  ;;  %v1301_v50 = vld [vmem:[#allocation2 + $0x88] sm:$0xf] }
  0xaf   : > { %v1302_v63 = vor.u32 %v1387_v51, %v1301_v50 }
  0xb2   : > { %657 = vmatpush.bf16.msrb.mxu0 %v1222_v61  ;;  %v1295_v61 = vld [vmem:[#allocation2 + $0x90] sm:$0xf0] }
  0xb3   : > { %v1298_v4 = vor.u32 %v1384_v60, %v1295_v61 }
 0x111   : > { %v279_v14 = vpop.f32.mrf.mxu1 }
 0x112   : > { %v283_v20 = vpack.c.bf16 %v279_v14, %v279_v14 }
 0x114   : > { %1175 = vmatmul.msk.bf16.vlgmr.msra.gmra.mxu2 %vm332_vm6, %v283_v20  ;;  %1176 = vmatmul.msk.bf16.vlgmr.msra.gmra.mxu3 %vm332_vm6, %v283_v20 }
 0x115   : > { %512 = vmatpush.bf16.msra.mxu3 %v1204_v16  ;;  %499 = vmatpush.bf16.msra.mxu2 %v1200_v18  ;;  %v1273_v16 = vld [vmem:[#allocation2 + $0x20] sm:$0xf]  ;;  %v1372_v18 = vld [vmem:[#allocation2 + $0x24] sm:$0xf] }
 0x119   : > { %v281_v27 = vpop.f32.mrf.mxu1  ;;  %513 = vmatpush.bf16.msra.mxu3 %v1188_v25  ;;  %500 = vmatpush.bf16.msra.mxu2 %v1184_v26  ;;  %v1278_v25 = vor.u32 %v1372_v18, %v1275_v22  ;;  %v1266_v26 = vor.u32 %v1371_v24, %v1265_v23  ;;  %v1404_v18 = vld [vmem:[#allocation2 + $0x124] sm:$0xf]  ;;  %v1337_v24 = vld [vmem:[#allocation2 + $0x108] sm:$0xf] }
 0x11a   : > { %v1369_v27 = vld [vmem:[#allocation2 + $0xc] sm:$0xf] }
 0x121   : > { %v437_v28 = vpop.f32.mrf.mxu1 }
 0x122   : > { %v441_v29 = vpack.c.bf16 %v437_v28, %v437_v28  ;;  %v1267_v28 = vld [vmem:[#allocation2 + $0x18] sm:$0xf0] }
 0x124   : > { %1177 = vmatmul.msk.bf16.vlgmr.msrb.gmra.mxu2 %vm332_vm6, %v283_v20  ;;  %1178 = vmatmul.msk.bf16.vlgmr.msrb.gmra.mxu3 %vm332_vm6, %v283_v20  ;;  %v1274_v20 = vor.u32 %v1374_v17, %v1273_v16  ;;  %v1406_v17 = vld [vmem:[#allocation2 + $0x12c] sm:$0xf0] }
 0x125   : > { %1215 = vmatmul.msk.bf16.vlgmr.msra.gmra.mxu0 %vm332_vm6, %v441_v29  ;;  %1216 = vmatmul.msk.bf16.vlgmr.msra.gmra.mxu1 %vm332_vm6, %v441_v29 }
 0x126   : > { %589 = vmatpush.bf16.msrb.mxu3 %v1698_v7  ;;  %558 = vmatpush.bf16.msrb.mxu2 %v1698_v7  ;;  %v580_v7 = vsel %vm579_vm7, 1.0, %v1599_v21 }
 0x127   : > { %v581_v32 = vpack.c.bf16 %v580_v7, %v580_v7  ;;  %751 = vmatpush.bf16.msra.mxu0 %v1274_v20  ;;  %v1368_v7 = vld [vmem:[#allocation2 + $0x4] sm:$0xf]  ;;  %764 = vmatpush.bf16.msra.mxu1 %v1278_v25  ;;  %v1347_v20 = vld [vmem:[#allocation2 + $0x130] sm:$0xf0]  ;;  %v1403_v25 = vld [vmem:[#allocation2 + $0x114] sm:$0xf0] }
 0x129   : > { %v439_v30 = vpop.f32.mrf.mxu1 }
 0x12a   : > { %590 = vmatpush.bf16.msrb.mxu3 %v1701_v8  ;;  %559 = vmatpush.bf16.msrb.mxu2 %v1701_v8  ;;  %v549_v8 = vsel %vm548_vm8, 1.0, %v1599_v21  ;;  %v1246_v21 = vor.u32 %v1415_v38, %v1245_v19  ;;  %v1270_v30 = vor.u32 %v1369_v27, %v1267_v28  ;;  %v1350_v27 = vor.u32 %v1404_v18, %v1347_v20  ;;  %v1401_v28 = vld [vmem:[#allocation2 + $0x10c] sm:$0xf] }
 0x12e   : > { %591 = vmatpush.bf16.msrb.mxu3 %v1711_v11  ;;  %560 = vmatpush.bf16.msrb.mxu2 %v1711_v11  ;;  %v550_v11 = vpack.c.bf16 %v549_v8, %v549_v8  ;;  %v1259_v8 = vld [vmem:[#allocation2 + $0x10] sm:$0xf0] }
 0x132   : > { %592 = vmatpush.bf16.msrb.mxu3 %v1722_v15  ;;  %561 = vmatpush.bf16.msrb.mxu2 %v1722_v15  ;;  %v1773_v15 = vpop.f32.mrf.mxu0 }
 0x133   : > { %v252_v16 = vpack.c.bf16 %v1773_v15, %v1773_v15  ;;  %v1338_v15 = vor.u32 %v1403_v25, %v1337_v24 }
 0x134   : > { %1213 = vmatmul.msk.bf16.vlgmr.msra.gmra.mxu2 %vm332_vm6, %v441_v29  ;;  %1214 = vmatmul.msk.bf16.vlgmr.msra.gmra.mxu3 %vm332_vm6, %v441_v29  ;;  %v1257_v29 = vld [vmem:[#allocation2] sm:$0xf] }
 0x136   : > { %682 = vmatpush.bf16.msra.mxu2 %v1246_v21  ;;  %695 = vmatpush.bf16.msra.mxu3 %v1250_v41  ;;  %v1391_v21 = vld [vmem:[#allocation2 + $0xb4] sm:$0xf0]  ;;  %v1319_v41 = vld [vmem:[#allocation2 + $0xb8] sm:$0xf0] }
 0x137   : > { %v1318_v48 = vor.u32 %v1391_v21, %v1317_v39  ;;  %v1322_v49 = vor.u32 %v1389_v40, %v1319_v41 }
 0x13a   : > { %v250_v33 = vpop.f32.mrf.mxu0  ;;  %683 = vmatpush.bf16.msra.mxu2 %v1230_v52  ;;  %696 = vmatpush.bf16.msra.mxu3 %v1234_v57  ;;  %v1303_v57 = vld [vmem:[#allocation2 + $0x98] sm:$0xf0] }
 0x142   : > { %v1775_v35 = vpop.f32.mrf.mxu0 }
 0x144   : > { %1218 = vmatmul.msk.bf16.vlgmr.msrb.gmra.mxu3 %vm231_vm2, %v581_v32  ;;  %1217 = vmatmul.msk.bf16.vlgmr.msrb.gmra.mxu2 %vm231_vm2, %v550_v11  ;;  %v1258_v32 = vor.u32 %v1370_v31, %v1257_v29  ;;  %v1262_v11 = vor.u32 %v1368_v7, %v1259_v8  ;;  %v1339_v29 = vld [vmem:[#allocation2 + $0x118] sm:$0xf0]  ;;  %v1402_v31 = vld [vmem:[#allocation2 + $0x10c] sm:$0xf0]  ;;  %v1400_v7 = vld [vmem:[#allocation2 + $0x104] sm:$0xf] }
 0x145   : > { %777 = vmatpush.bf16.msrb.mxu2 %v1282_v9  ;;  %790 = vmatpush.bf16.msrb.mxu3 %v1286_v12  ;;  %v1353_v9 = vld [vmem:[#allocation2 + $0x128] sm:$0xf]  ;;  %v1405_v12 = vld [vmem:[#allocation2 + $0x12c] sm:$0xf]  ;;  %v1331_v8 = vld [vmem:[#allocation2 + $0x110] sm:$0xf0] }
 0x146   : > { %752 = vmatpush.bf16.msra.mxu0 %v1258_v32  ;;  %765 = vmatpush.bf16.msra.mxu1 %v1262_v11  ;;  %v1354_v22 = vor.u32 %v1407_v10, %v1353_v9  ;;  %v1342_v32 = vor.u32 %v1401_v28, %v1339_v29 }
 0x149   : > { %778 = vmatpush.bf16.msrb.mxu2 %v1266_v26  ;;  %791 = vmatpush.bf16.msrb.mxu3 %v1270_v30  ;;  %v1329_v30 = vld [vmem:[#allocation2 + $0x100] sm:$0xf] }
 0x14a   : > { %v408_v36 = vpop.f32.mrf.mxu0  ;;  %v1330_v11 = vor.u32 %v1402_v31, %v1329_v30 }
 0x197   : > { %v1777_v37 = vpop.f32.mrf.mxu2  ;;  %v1779_v34 = vpop.f32.mrf.mxu3 }
 0x19f   : > { %v347_v42 = vpop.f32.mrf.mxu2  ;;  %v360_v43 = vpop.f32.mrf.mxu3 }
 0x1a0   : > { %v1309_v42 = vld [vmem:[#allocation2 + $0xa0] sm:$0xf]  ;;  %v1390_v43 = vld [vmem:[#allocation2 + $0xac] sm:$0xf0] }
 0x1a1   : > { %v1310_v52 = vor.u32 %v1390_v43, %v1309_v42 }
 0x1a2   : > { %v1781_v55 = vpop.f32.mrf.mxu0  ;;  %v1783_v56 = vpop.f32.mrf.mxu1 }
 0x1a7   : > { %v1785_v0 = vpop.f32.mrf.mxu2  ;;  %v1787_v1 = vpop.f32.mrf.mxu3 }
 0x1aa   : > { %v530_v2 = vpop.f32.mrf.mxu0  ;;  %v543_v3 = vpop.f32.mrf.mxu1 }
 0x1ab   : > { %v1306_v2 = vor.u32 %v1385_v54, %v1303_v57  ;;  %v1294_v3 = vor.u32 %v1386_v59, %v1293_v58 }
 0x1af   : > { %v373_v13 = vpop.f32.mrf.mxu2  ;;  %v386_v14 = vpop.f32.mrf.mxu3 }
 0x1b0   : > { %v1355_v13 = vld [vmem:[#allocation2 + $0x138] sm:$0xf0]  ;;  %v1345_v14 = vld [vmem:[#allocation2 + $0x120] sm:$0xf] }
 0x1b1   : > { %v1358_v23 = vor.u32 %v1405_v12, %v1355_v13  ;;  %v1346_v26 = vor.u32 %v1406_v17, %v1345_v14  ;;  %v995_v12 = vld [vmem:[%s1859_s3] sm:$0xf] }
 0x1b2   : > { %v997_v18 = vperm.slane %v995_v12, 0  ;;  %v1000_v28 = vperm.slane %v995_v12, 3 }
 0x1b7   : > { %v1789_v33 = vpop.f32.mrf.mxu2  ;;  %v1791_v36 = vpop.f32.mrf.mxu3 }
 0x1bf   : > { %v504_v19 = vpop.f32.mrf.mxu2  ;;  %v517_v38 = vpop.f32.mrf.mxu3 }
 0x1c0   : > { %v1334_v19 = vor.u32 %v1400_v7, %v1331_v8  ;;  %v410_v38 = vpack.c.bf16 %v1775_v35, %v1775_v35 }
 0x1c7   : > { %v594_v46 = vpop.f32.mrf.mxu3  ;;  %v563_v62 = vpop.f32.mrf.mxu2 }
 0x1c8   : > { %v598_v47 = vpack.c.bf16 %v594_v46, %v594_v46  ;;  %v567_v39 = vpack.c.bf16 %v563_v62, %v563_v62 }
 0x1ca   : > { %1251 = vmatmul.msk.bf16.vlgmr.msrb.gmra.mxu0 %vm332_vm6, %v598_v47  ;;  %1252 = vmatmul.msk.bf16.vlgmr.msrb.gmra.mxu1 %vm332_vm6, %v598_v47 }
 0x1cb   : > { %1253 = vmatmul.msk.bf16.vlgmr.msra.gmra.mxu2 %vm332_vm6, %v598_v47  ;;  %1254 = vmatmul.msk.bf16.vlgmr.msra.gmra.mxu3 %vm332_vm6, %v598_v47 }
 0x1cc   : > { %872 = vmatpush.bf16.msra.mxu2 %v1318_v48  ;;  %885 = vmatpush.bf16.msra.mxu3 %v1322_v49 }
 0x1cd   : > { %846 = vmatpush.bf16.msrb.mxu0 %v1310_v52  ;;  %859 = vmatpush.bf16.msrb.mxu1 %v1314_v53 }
 0x1cf   : > { %v596_v5 = vpop.f32.mrf.mxu3  ;;  %v565_v6 = vpop.f32.mrf.mxu2 }
 0x1d0   : > { %873 = vmatpush.bf16.msra.mxu2 %v1302_v63  ;;  %886 = vmatpush.bf16.msra.mxu3 %v1306_v2 }
 0x1d1   : > { %847 = vmatpush.bf16.msrb.mxu0 %v1294_v3  ;;  %860 = vmatpush.bf16.msrb.mxu1 %v1298_v4 }
 0x1da   : > { %1287 = vmatmul.msk.bf16.vlgmr.msra.gmra.mxu0 %vm332_vm6, %v252_v16  ;;  %1288 = vmatmul.msk.bf16.vlgmr.msra.gmra.mxu1 %vm332_vm6, %v252_v16 }
 0x1db   : > { %1289 = vmatmul.msk.bf16.vlgmr.msrb.gmra.mxu2 %vm332_vm6, %v252_v16  ;;  %1290 = vmatmul.msk.bf16.vlgmr.msrb.gmra.mxu3 %vm332_vm6, %v252_v16 }
 0x1dc   : > { %967 = vmatpush.bf16.msrb.mxu2 %v1354_v22  ;;  %980 = vmatpush.bf16.msrb.mxu3 %v1358_v23 }
 0x1dd   : > { %941 = vmatpush.bf16.msra.mxu0 %v1346_v26  ;;  %954 = vmatpush.bf16.msra.mxu1 %v1350_v27  ;;  %v999_v26 = vperm.slane %v995_v12, 2 }
 0x1e0   : > { %968 = vmatpush.bf16.msrb.mxu2 %v1338_v15  ;;  %981 = vmatpush.bf16.msrb.mxu3 %v1342_v32 }
 0x1e1   : > { %942 = vmatpush.bf16.msra.mxu0 %v1330_v11  ;;  %955 = vmatpush.bf16.msra.mxu1 %v1334_v19 }
 0x1ea   : > { %1323 = vmatmul.msk.bf16.vlgmr.msrb.gmra.mxu0 %vm332_vm6, %v410_v38  ;;  %1324 = vmatmul.msk.bf16.vlgmr.msrb.gmra.mxu1 %vm332_vm6, %v410_v38 }
 0x1eb   : > { %1325 = vmatmul.msk.bf16.vlgmr.msra.gmra.mxu2 %vm332_vm6, %v410_v38  ;;  %1326 = vmatmul.msk.bf16.vlgmr.msra.gmra.mxu3 %vm332_vm6, %v410_v38 }
 0x1fa   : > { %1359 = vmatmul.msk.bf16.vlgmr.msra.gmra.mxu0 %vm332_vm6, %v567_v39  ;;  %1360 = vmatmul.msk.bf16.vlgmr.msra.gmra.mxu1 %vm332_vm6, %v567_v39 }
 0x1fb   : > { %1361 = vmatmul.msk.bf16.vlgmr.msrb.gmra.mxu2 %vm332_vm6, %v567_v39  ;;  %1362 = vmatmul.msk.bf16.vlgmr.msrb.gmra.mxu3 %vm332_vm6, %v567_v39 }
 0x247   : > { %v659_v21 = vpop.f32.mrf.mxu0  ;;  %v672_v40 = vpop.f32.mrf.mxu1 }
 0x24e   : > { %v685_v35 = vpop.f32.mrf.mxu2  ;;  %v698_v41 = vpop.f32.mrf.mxu3 }
 0x24f   : > { %v661_v42 = vpop.f32.mrf.mxu0  ;;  %v674_v43 = vpop.f32.mrf.mxu1 }
 0x256   : > { %v687_v44 = vpop.f32.mrf.mxu2  ;;  %v700_v45 = vpop.f32.mrf.mxu3 }
 0x257   : > { %v754_v46 = vpop.f32.mrf.mxu0  ;;  %v767_v47 = vpop.f32.mrf.mxu1 }
 0x258   : > { %v755_v4 = vadd.f32 %v754_v46, %v1777_v37  ;;  %v768_v5 = vadd.f32 %v767_v47, %v1779_v34  ;;  %v998_v37 = vperm.slane %v995_v12, 1 }
 0x25e   : > { %v780_v48 = vpop.f32.mrf.mxu2  ;;  %v793_v49 = vpop.f32.mrf.mxu3 }
 0x25f   : > { %v756_v50 = vpop.f32.mrf.mxu0  ;;  %v769_v51 = vpop.f32.mrf.mxu1  ;;  %v781_v34 = vadd.f32 %v780_v48, %v1785_v0  ;;  %v794_v22 = vadd.f32 %v793_v49, %v1787_v1 }
 0x266   : > { %v782_v52 = vpop.f32.mrf.mxu2  ;;  %v795_v53 = vpop.f32.mrf.mxu3 }
 0x267   : > { %v849_v54 = vpop.f32.mrf.mxu0  ;;  %v862_v57 = vpop.f32.mrf.mxu1 }
 0x268   : > { %v850_v62 = vadd.f32 %v849_v54, %v1789_v33  ;;  %v863_v63 = vadd.f32 %v862_v57, %v1791_v36 }
 0x26a   : > { %v987_v14 = vadd.f32 %v850_v62, %v755_v4  ;;  %v988_v16 = vadd.f32 %v863_v63, %v768_v5 }
 0x26e   : > { %v875_v58 = vpop.f32.mrf.mxu2  ;;  %v888_v59 = vpop.f32.mrf.mxu3 }
 0x26f   : > { %v851_v60 = vpop.f32.mrf.mxu0  ;;  %v864_v61 = vpop.f32.mrf.mxu1  ;;  %v876_v33 = vadd.f32 %v875_v58, %v1781_v55  ;;  %v889_v36 = vadd.f32 %v888_v59, %v1783_v56 }
 0x271   : > { %v989_v23 = vadd.f32 %v876_v33, %v781_v34  ;;  %v990_v24 = vadd.f32 %v889_v36, %v794_v22 }
 0x276   : > { %v877_v2 = vpop.f32.mrf.mxu2  ;;  %v890_v3 = vpop.f32.mrf.mxu3 }
 0x277   : > { %v944_v6 = vpop.f32.mrf.mxu0  ;;  %v957_v9 = vpop.f32.mrf.mxu1 }
 0x278   : > { %v945_v10 = vadd.f32 %v944_v6, %v659_v21  ;;  %v958_v13 = vadd.f32 %v957_v9, %v672_v40 }
 0x27a   : > { %v991_v17 = vadd.f32 %v987_v14, %v945_v10  ;;  %v992_v20 = vadd.f32 %v988_v16, %v958_v13 }
 0x27c   : > { %v1005_v29 = vadd.f32 %v997_v18, %v991_v17  ;;  %v1006_v30 = vadd.f32 %v998_v37, %v992_v20 }
 0x27e   : > { %v970_v25 = vpop.f32.mrf.mxu2  ;;  %v983_v27 = vpop.f32.mrf.mxu3  ;;  %v1009_v32 = vmax.f32 %v1005_v29, 0.0  ;;  %v1010_v11 = vmax.f32 %v1006_v30, 0.0 }
 0x27f   : > { %v971_v31 = vadd.f32 %v970_v25, %v685_v35  ;;  %v984_v55 = vadd.f32 %v983_v27, %v698_v41  ;;  %v946_v7 = vpop.f32.mrf.mxu0  ;;  %v959_v56 = vpop.f32.mrf.mxu1 }
 0x280   : > { %v1013_v40 = vmax.f32 %v1009_v32, %v1010_v11 }
 0x281   : > { %v993_v8 = vadd.f32 %v989_v23, %v971_v31  ;;  %v994_v15 = vadd.f32 %v990_v24, %v984_v55 }
 0x283   : > { %v1007_v19 = vadd.f32 %v999_v26, %v993_v8  ;;  %v1008_v0 = vadd.f32 %v1000_v28, %v994_v15 }
 0x285   : > { %v1011_v38 = vmax.f32 %v1007_v19, 0.0  ;;  %v1012_v1 = vmax.f32 %v1008_v0, 0.0 }
 0x286   : > { %v972_v39 = vpop.f32.mrf.mxu2  ;;  %v985_v21 = vpop.f32.mrf.mxu3 }
 0x287   : > { %v1014_v42 = vmax.f32 %v1011_v38, %v1012_v1 }
 0x289   : > { %v1015_v43 = vmax.f32 %v1013_v40, %v1014_v42 }
 0x28b   : > { %1016 = vmax.xlane.f32.xlu1 %v1015_v43 }
 0x2fe   : > { %v1017_v44 = vpop.xlane.xlu1 %1016 }
 0x2ff   : > { %v1018_v45 = vsub.f32 %v1009_v32, %v1017_v44  ;;  %v1019_v35 = vsub.f32 %v1010_v11, %v1017_v44  ;;  %v1020_v41 = vsub.f32 %v1011_v38, %v1017_v44  ;;  %v1021_v46 = vsub.f32 %v1012_v1, %v1017_v44 }
 0x301   : > { %v1022_v47 = vmul.f32 1.442695, %v1018_v45  ;;  %v1024_v48 = vmul.f32 1.442695, %v1019_v35  ;;  %v1026_v49 = vmul.f32 1.442695, %v1020_v41 }
 0x302   : > { %v1028_v50 = vmul.f32 1.442695, %v1021_v46 }
 0x303   : > { %1483 = vpow2.f32 %v1022_v47 }
 0x304   : > { %1485 = vpow2.f32 %v1024_v48 }
 0x305   : > { %1487 = vpow2.f32 %v1026_v49 }
 0x306   : > { %1489 = vpow2.f32 %v1028_v50 }
 0x309   : > { %v1484_v51 = vpop.eup %1483 }
 0x30a   : > { %v1486_v52 = vpop.eup %1485 }
 0x30b   : > { %v1030_v53 = vadd.f32 %v1486_v52, %v1484_v51  ;;  %v1488_v54 = vpop.eup %1487 }
 0x30c   : > { %v1490_v58 = vpop.eup %1489 }
 0x30d   : > { %v1031_v57 = vadd.f32 %v1488_v54, %v1030_v53 }
 0x30f   : > { %v1032_v59 = vadd.f32 %v1490_v58, %v1031_v57 }
 0x311   : > { %1033 = vadd.xlane.f32.xlu2 %v1032_v59 }
 0x384   : > { %v1034_v60 = vpop.xlane.xlu2 %1033 }
 0x385   : > { %1491 = vlog2.f32 %v1034_v60 }
 0x38b   : > { %v1492_v61 = vpop.eup %1491 }
 0x38c   : > { %v1036_v62 = vmul.f32 0.6931472, %v1492_v61 }
 0x38e   : > { %v1037_v63 = vsub.f32 %v1018_v45, %v1036_v62  ;;  %v1038_v2 = vsub.f32 %v1019_v35, %v1036_v62  ;;  %v1039_v3 = vsub.f32 %v1020_v41, %v1036_v62  ;;  %v1040_v4 = vsub.f32 %v1021_v46, %v1036_v62 }
 0x390   : > { %1041 = vst [vmem:[%s205_s27] sm:$0xff] %v1037_v63 }
 0x391   : > { %1042 = vst [vmem:[%s205_s27 + $0x8] sm:$0xff] %v1038_v2 }
 0x392   : > { %1043 = vst [vmem:[%s205_s27 + $0x10] sm:$0xff] %v1039_v3 }
 0x393   : > { %1044 = vst [vmem:[%s205_s27 + $0x18] sm:$0xff] %v1040_v4 }
 0x394   : > { %1550 = shalt.err (!%p1547_p8)
}
 0x395   : > { %1421 = dma.vmem_to_hbm [thread:$0]  (%p1664_p5), %s1060_s28, 512, %s1062_s29, %s1046_s19  }
 0x396 PF: > { %p1433_p9 = scmp.ge.s32.totalorder %s1589_s18, 2  ;;  %s1073_s11 = sand.u32 1, %s1577_s15  }
 0x397   : > { %s1074_s12 = scalar_lea.sflag [#allocation4], %s1073_s11 }
 0x398   : > { %p1428_p10 = pnand %p1433_p9, %p1668_p6 }
 0x39a   : > { %p1429_p11 = pneg %p1428_p10 }
 0x39c   : > { %1572 = dma.done.wait (%p1429_p11), %s1074_s12, 512  }
 0x39d   : > { %1574 = vsyncadd (%p1429_p11), %s1074_s12, 4294966784  ;;  %p15_p12 = scmp.ge.s32.totalorder %s1651_s21, 4   ;;  %s1863_s15 = smov %s1581_s16 }
 0x39e   : > { %s1864_s16 = smov %s1585_s17  ;;  %s1865_s17 = smov %s1662_s24 }
 0x39f   : > { %s1866_s18 = smov %s1651_s21  ;;  %17 = sbr.rel (!%p15_p12) target bundleno = 4 (0x4), region = 76 }
 0x3a4   :  { %1080 = vsyncpa [#allocation3], 1 }
 0x3a5   :  { %1082 = vsyncpa [#allocation3 + $0x1], 1 }
 0x3a6   :  { %1083 = vsyncpa [#allocation4], 1 }
 0x3a7   :  { %1085 = vsyncpa [#allocation4 + $0x1], 1 }

</bundles_post_ra>
